<compile_context>
chip_gen: v7x
topology: tpu7x:2x2x1
jax: 0.10.0
libtpu: 0.0.40
codegen_flags: <defaults>
</compile_context>

<pallas_src>
import functools

import jax
import jax.numpy as jnp
from jax.experimental import pallas as pl
from jax.experimental.pallas import tpu as pltpu


LANE = 128       # pad target for F / C (lane / MXU-contraction dims)
NODE_PAD = 32    # pad target for N (bf16 sublane-friendly; full-array block)
GRAPH_PAD = 16   # pad target for G (bf16 packed-sublane tile height)


def _round_up(v, m):
    return ((v + m - 1) // m) * m


def _pad2(arr, rows, cols, dtype):
    r0, c0 = arr.shape
    return jnp.pad(arr, ((0, rows - r0), (0, cols - c0))).astype(dtype)


def _gcn_kernel(a_ref, x_ref, ws_ref, bpool_ref, wfc_ref, bfc_ref,
                logp_ref, xr_ref, *, num_layers, num_classes):
    """Fused GCN forward (all operands padded to MXU/vreg friendly tiles).

    a_ref     : (Np, Np)    bf16  normalized adjacency D^-1/2 (A+I) D^-1/2 (zero-padded)
    x_ref     : (Np, Fp)    bf16  node features (zero-padded)
    ws_ref    : (L, Fp, Fp) bf16  stacked per-layer GCNConv weights (bias=False)
    bpool_ref : (Gp, Np)    bf16  one-hot graph-membership matrix (global_add_pool)
    wfc_ref   : (Fp, Cp)    bf16  final linear weight
    bfc_ref   : (1, Cp)     f32   final linear bias (padded classes = 0, masked below)
    logp_ref  : (Gp, Cp)    f32   log_softmax output slab
    xr_ref    : (Gp, Fp)    f32   pooled-feature output slab
    """
    a = a_ref[...]            # (Np, Np) bf16
    x = x_ref[...]            # (Np, Fp) bf16

    # L x GCNConv: x <- relu( A_norm @ (x @ W_l) ), f32 accumulation on the MXU.
    for l in range(num_layers):
        xw = jnp.dot(x, ws_ref[l], preferred_element_type=jnp.float32)
        h = jnp.dot(a, xw.astype(jnp.bfloat16),
                    preferred_element_type=jnp.float32)
        x = jnp.maximum(h, 0.0).astype(jnp.bfloat16)   # ReLU in f32, bf16 for next MXU op

    # global_add_pool: per-graph segment sum over nodes == B @ x (padded rows are 0).
    xr = jnp.dot(bpool_ref[...], x, preferred_element_type=jnp.float32)
    xr_ref[...] = xr

    # dropout(p=0.5) is identity here (eval mode, training=False).

    # fc + log_softmax(dim=1) in f32; mask padded class lanes out of the softmax.
    logits = jnp.dot(xr.astype(jnp.bfloat16), wfc_ref[...],
                     preferred_element_type=jnp.float32) + bfc_ref[...]
    lane = jax.lax.broadcasted_iota(jnp.int32, logits.shape, 1)
    logits = jnp.where(lane < num_classes, logits, jnp.float32(-1e30))
    m = jnp.max(logits, axis=-1, keepdims=True)
    s = logits - m
    lse = jnp.log(jnp.sum(jnp.exp(s), axis=-1, keepdims=True))
    logp_ref[...] = s - lse


# ----------------------------------------------------------------------------
# One-time parameter prep (hoisted out of the hot path).
# ----------------------------------------------------------------------------
def prepare_params(ws, w_fc, b_fc):
    f, c = w_fc.shape
    fp = _round_up(f, LANE)
    cp = _round_up(c, LANE)
    ws_p = jnp.stack([_pad2(w, fp, fp, jnp.bfloat16) for w in ws])   # (L, Fp, Fp)
    wfc_p = _pad2(w_fc, fp, cp, jnp.bfloat16)                        # (Fp, Cp)
    bfc_p = _pad2(b_fc, 1, cp, jnp.float32)                          # (1, Cp)
    return ws_p, wfc_p, bfc_p


# Once-per-graph input prep (also hoisted out of the hot call).
def prepare_graph(a_norm, x, b_pool):
    n, f = x.shape
    g = b_pool.shape[0]
    np_ = _round_up(n, NODE_PAD)
    fp = _round_up(f, LANE)
    gp = _round_up(g, GRAPH_PAD)
    a_p = _pad2(a_norm, np_, np_, jnp.bfloat16)       # (Np, Np)
    x_p = _pad2(x, np_, fp, jnp.bfloat16)             # (Np, Fp)
    bpool_p = _pad2(b_pool, gp, np_, jnp.bfloat16)    # (Gp, Np)
    return a_p, x_p, bpool_p


# ----------------------------------------------------------------------------
# Hot path: single jitted call wrapping one pallas_call; output slices fuse
# around the custom call.
# ----------------------------------------------------------------------------
@functools.partial(jax.jit,
                   static_argnames=("num_graphs", "num_features", "num_classes"))
def gcn_forward_padded(a_p, x_p, ws_p, bpool_p, wfc_p, bfc_p, *,
                       num_graphs, num_features, num_classes):
    np_ = a_p.shape[0]
    num_layers, fp, _ = ws_p.shape
    cp = wfc_p.shape[1]
    gp = bpool_p.shape[0]

    def full_spec(shape):
        # single grid step, full-array block resident in VMEM
        return pl.BlockSpec(shape, lambda i, _s=shape: (0,) * len(_s))

    kernel = functools.partial(_gcn_kernel,
                               num_layers=num_layers,
                               num_classes=num_classes)

    flops = (2 * num_layers * (np_ * fp * fp + np_ * np_ * fp)
             + 2 * gp * np_ * fp + 2 * gp * fp * cp)
    bytes_accessed = (2 * (a_p.size + x_p.size + ws_p.size + bpool_p.size + wfc_p.size)
                      + 4 * bfc_p.size + 4 * (gp * cp + gp * fp))
    transcendentals = gp * cp + gp   # exp per logit + log per row

    fn = pl.pallas_call(
        kernel,
        grid=(1,),
        in_specs=[
            full_spec((np_, np_)),            # a_norm
            full_spec((np_, fp)),             # x
            full_spec((num_layers, fp, fp)),  # stacked conv weights
            full_spec((gp, np_)),             # b_pool
            full_spec((fp, cp)),              # w_fc
            full_spec((1, cp)),               # b_fc
        ],
        out_specs=[
            full_spec((gp, cp)),              # log_softmax slab
            full_spec((gp, fp)),              # pooled xr slab
        ],
        out_shape=(
            jax.ShapeDtypeStruct((gp, cp), jnp.float32),
            jax.ShapeDtypeStruct((gp, fp), jnp.float32),
        ),
        compiler_params=pltpu.CompilerParams(
            dimension_semantics=("arbitrary",)),
        cost_estimate=pl.CostEstimate(flops=flops,
                                      transcendentals=transcendentals,
                                      bytes_accessed=bytes_accessed),
    )
    logp_p, xr_p = fn(a_p, x_p, ws_p, bpool_p, wfc_p, bfc_p)
    # slice padded slabs back to the module's output shapes (fused inside jit)
    return logp_p[:num_graphs, :num_classes], xr_p[:num_graphs, :num_features]


def build_normalized_adjacency(edge_index, num_nodes):
    """Dense D^-1/2 (A + I) D^-1/2 from a (2, E) edge_index (plain-JAX glue).

    Matches PyG gcn_norm on undirected graphs: diagonal is forced to exactly 1
    (add_remaining_self_loops semantics) even if edge_index already contains
    self loops.
    """
    src, dst = edge_index[0], edge_index[1]
    adj = jnp.zeros((num_nodes, num_nodes), jnp.float32)
    adj = adj.at[src, dst].set(1.0)
    adj = jnp.maximum(adj, adj.T)                       # symmetrize
    eye = jnp.eye(num_nodes, dtype=jnp.float32)
    adj = adj * (1.0 - eye) + eye                       # self loops with weight 1
    deg = jnp.sum(adj, axis=1)
    dinv = jnp.where(deg > 0, 1.0 / jnp.sqrt(deg), 0.0)
    return adj * dinv[:, None] * dinv[None, :]


if __name__ == "__main__":
    key = jax.random.PRNGKey(0)

    num_nodes = 32          # N (two graphs of 16 nodes each)
    num_features = 32       # F
    num_classes = 8         # C
    num_layers = 4
    num_graphs = 2          # G
    num_edges = 64

    keys = jax.random.split(key, 4 + num_layers)

    # node features
    x = jax.random.normal(keys[0], (num_nodes, num_features), jnp.float32)

    # random edge_index (2, E), then densify + GCN-normalize in glue
    edge_index = jax.random.randint(keys[1], (2, num_edges), 0, num_nodes,
                                    dtype=jnp.int32)
    a_norm = build_normalized_adjacency(edge_index, num_nodes)

    # batch assignment -> one-hot pooling matrix (G, N)
    batch = jnp.concatenate([
        jnp.zeros((num_nodes // 2,), jnp.int32),
        jnp.ones((num_nodes - num_nodes // 2,), jnp.int32)])
    b_pool = jax.nn.one_hot(batch, num_graphs, dtype=jnp.float32).T  # (G, N)

    # deterministic parameter init (GCNConv weights bias=False, fc with bias)
    scale_conv = 1.0 / jnp.sqrt(jnp.float32(num_features))
    ws = [scale_conv * jax.random.normal(keys[4 + l],
                                         (num_features, num_features),
                                         jnp.float32)
          for l in range(num_layers)]
    w_fc = scale_conv * jax.random.normal(keys[2],
                                          (num_features, num_classes),
                                          jnp.float32)
    b_fc = 0.01 * jax.random.normal(keys[3], (1, num_classes), jnp.float32)

    # --- one-time prep (outside the hot path) ---
    ws_p, wfc_p, bfc_p = prepare_params(ws, w_fc, b_fc)
    a_p, x_p, bpool_p = prepare_graph(a_norm, x, b_pool)
    jax.block_until_ready((ws_p, wfc_p, bfc_p, a_p, x_p, bpool_p))

    # --- hot path: single jitted pallas_call ---
    log_probs, xr = gcn_forward_padded(a_p, x_p, ws_p, bpool_p, wfc_p, bfc_p,
                                       num_graphs=num_graphs,
                                       num_features=num_features,
                                       num_classes=num_classes)
    jax.block_until_ready((log_probs, xr))

    assert log_probs.shape == (num_graphs, num_classes)
    assert xr.shape == (num_graphs, num_features)
    assert bool(jnp.all(jnp.isfinite(log_probs)))
    assert bool(jnp.all(jnp.isfinite(xr)))
    # log_softmax rows must (exp-)sum to ~1
    assert jnp.allclose(jnp.sum(jnp.exp(log_probs), axis=1), 1.0, atol=1e-3)

    print("KERNEL_OK")
</pallas_src>

<mosaic_0001>
module attributes {stable_mosaic.version = 11 : i64} {
  func.func @_gcn_kernel(%arg0: i32, %arg1: memref<32x32xbf16, #tpu.memory_space<vmem>>, %arg2: memref<32x128xbf16, #tpu.memory_space<vmem>>, %arg3: memref<4x128x128xbf16, #tpu.memory_space<vmem>>, %arg4: memref<16x32xbf16, #tpu.memory_space<vmem>>, %arg5: memref<128x128xbf16, #tpu.memory_space<vmem>>, %arg6: memref<1x128xf32, #tpu.memory_space<vmem>>, %arg7: memref<16x128xf32, #tpu.memory_space<vmem>>, %arg8: memref<16x128xf32, #tpu.memory_space<vmem>>) attributes {dimension_semantics = [#tpu.dimension_semantics<arbitrary>], iteration_bounds = array<i64: 1>, scalar_prefetch = 0 : i64, scratch_operands = 0 : i64, tpu.core_type = #tpu.core_type<tc>, window_params = [{pipeline_mode = #tpu.pipeline_mode<synchronous>, transform_indices = @transform_0, window_bounds = array<i64: 32, 32>}, {pipeline_mode = #tpu.pipeline_mode<synchronous>, transform_indices = @transform_1, window_bounds = array<i64: 32, 128>}, {pipeline_mode = #tpu.pipeline_mode<synchronous>, transform_indices = @transform_2, window_bounds = array<i64: 4, 128, 128>}, {pipeline_mode = #tpu.pipeline_mode<synchronous>, transform_indices = @transform_3, window_bounds = array<i64: 16, 32>}, {pipeline_mode = #tpu.pipeline_mode<synchronous>, transform_indices = @transform_4, window_bounds = array<i64: 128, 128>}, {pipeline_mode = #tpu.pipeline_mode<synchronous>, transform_indices = @transform_5, window_bounds = array<i64: 1, 128>}, {pipeline_mode = #tpu.pipeline_mode<synchronous>, transform_indices = @transform_6, window_bounds = array<i64: 16, 128>}, {pipeline_mode = #tpu.pipeline_mode<synchronous>, transform_indices = @transform_7, window_bounds = array<i64: 16, 128>}]} {
    %c0 = arith.constant 0 : index
    %c0_0 = arith.constant 0 : index
    %0 = vector.load %arg1[%c0, %c0_0] : memref<32x32xbf16, #tpu.memory_space<vmem>>, vector<32x32xbf16>
    %c0_1 = arith.constant 0 : index
    %c0_2 = arith.constant 0 : index
    %1 = vector.load %arg2[%c0_1, %c0_2] : memref<32x128xbf16, #tpu.memory_space<vmem>>, vector<32x128xbf16>
    %c0_3 = arith.constant 0 : index
    %c0_4 = arith.constant 0 : index
    %c0_5 = arith.constant 0 : index
    %2 = vector.load %arg3[%c0_3, %c0_4, %c0_5] : memref<4x128x128xbf16, #tpu.memory_space<vmem>>, vector<1x128x128xbf16>
    %3 = vector.shape_cast %2 : vector<1x128x128xbf16> to vector<128x128xbf16>
    %cst = arith.constant dense<0.000000e+00> : vector<32x128xf32>
    %4 = tpu.matmul %1, %3, %cst {dimension_numbers = #tpu.dot_dimension_numbers<[1], [0], [0], [1], [0, 0, 1, 1], [], []>} : vector<32x128xbf16>, vector<128x128xbf16>, vector<32x128xf32> -> vector<32x128xf32>
    %5 = arith.truncf %4 : vector<32x128xf32> to vector<32x128xbf16>
    %cst_6 = arith.constant dense<0.000000e+00> : vector<32x128xf32>
    %6 = tpu.matmul %0, %5, %cst_6 {dimension_numbers = #tpu.dot_dimension_numbers<[1], [0], [0], [1], [0, 0, 1, 1], [], []>} : vector<32x32xbf16>, vector<32x128xbf16>, vector<32x128xf32> -> vector<32x128xf32>
    %cst_7 = arith.constant 0.000000e+00 : f32
    %7 = vector.broadcast %cst_7 : f32 to vector<32x128xf32>
    %8 = arith.maximumf %6, %7 : vector<32x128xf32>
    %9 = arith.truncf %8 : vector<32x128xf32> to vector<32x128xbf16>
    %c1 = arith.constant 1 : index
    %c0_8 = arith.constant 0 : index
    %c0_9 = arith.constant 0 : index
    %10 = vector.load %arg3[%c1, %c0_8, %c0_9] : memref<4x128x128xbf16, #tpu.memory_space<vmem>>, vector<1x128x128xbf16>
    %11 = vector.shape_cast %10 : vector<1x128x128xbf16> to vector<128x128xbf16>
    %cst_10 = arith.constant dense<0.000000e+00> : vector<32x128xf32>
    %12 = tpu.matmul %9, %11, %cst_10 {dimension_numbers = #tpu.dot_dimension_numbers<[1], [0], [0], [1], [0, 0, 1, 1], [], []>} : vector<32x128xbf16>, vector<128x128xbf16>, vector<32x128xf32> -> vector<32x128xf32>
    %13 = arith.truncf %12 : vector<32x128xf32> to vector<32x128xbf16>
    %cst_11 = arith.constant dense<0.000000e+00> : vector<32x128xf32>
    %14 = tpu.matmul %0, %13, %cst_11 {dimension_numbers = #tpu.dot_dimension_numbers<[1], [0], [0], [1], [0, 0, 1, 1], [], []>} : vector<32x32xbf16>, vector<32x128xbf16>, vector<32x128xf32> -> vector<32x128xf32>
    %cst_12 = arith.constant 0.000000e+00 : f32
    %15 = vector.broadcast %cst_12 : f32 to vector<32x128xf32>
    %16 = arith.maximumf %14, %15 : vector<32x128xf32>
    %17 = arith.truncf %16 : vector<32x128xf32> to vector<32x128xbf16>
    %c2 = arith.constant 2 : index
    %c0_13 = arith.constant 0 : index
    %c0_14 = arith.constant 0 : index
    %18 = vector.load %arg3[%c2, %c0_13, %c0_14] : memref<4x128x128xbf16, #tpu.memory_space<vmem>>, vector<1x128x128xbf16>
    %19 = vector.shape_cast %18 : vector<1x128x128xbf16> to vector<128x128xbf16>
    %cst_15 = arith.constant dense<0.000000e+00> : vector<32x128xf32>
    %20 = tpu.matmul %17, %19, %cst_15 {dimension_numbers = #tpu.dot_dimension_numbers<[1], [0], [0], [1], [0, 0, 1, 1], [], []>} : vector<32x128xbf16>, vector<128x128xbf16>, vector<32x128xf32> -> vector<32x128xf32>
    %21 = arith.truncf %20 : vector<32x128xf32> to vector<32x128xbf16>
    %cst_16 = arith.constant dense<0.000000e+00> : vector<32x128xf32>
    %22 = tpu.matmul %0, %21, %cst_16 {dimension_numbers = #tpu.dot_dimension_numbers<[1], [0], [0], [1], [0, 0, 1, 1], [], []>} : vector<32x32xbf16>, vector<32x128xbf16>, vector<32x128xf32> -> vector<32x128xf32>
    %cst_17 = arith.constant 0.000000e+00 : f32
    %23 = vector.broadcast %cst_17 : f32 to vector<32x128xf32>
    %24 = arith.maximumf %22, %23 : vector<32x128xf32>
    %25 = arith.truncf %24 : vector<32x128xf32> to vector<32x128xbf16>
    %c3 = arith.constant 3 : index
    %c0_18 = arith.constant 0 : index
    %c0_19 = arith.constant 0 : index
    %26 = vector.load %arg3[%c3, %c0_18, %c0_19] : memref<4x128x128xbf16, #tpu.memory_space<vmem>>, vector<1x128x128xbf16>
    %27 = vector.shape_cast %26 : vector<1x128x128xbf16> to vector<128x128xbf16>
    %cst_20 = arith.constant dense<0.000000e+00> : vector<32x128xf32>
    %28 = tpu.matmul %25, %27, %cst_20 {dimension_numbers = #tpu.dot_dimension_numbers<[1], [0], [0], [1], [0, 0, 1, 1], [], []>} : vector<32x128xbf16>, vector<128x128xbf16>, vector<32x128xf32> -> vector<32x128xf32>
    %29 = arith.truncf %28 : vector<32x128xf32> to vector<32x128xbf16>
    %cst_21 = arith.constant dense<0.000000e+00> : vector<32x128xf32>
    %30 = tpu.matmul %0, %29, %cst_21 {dimension_numbers = #tpu.dot_dimension_numbers<[1], [0], [0], [1], [0, 0, 1, 1], [], []>} : vector<32x32xbf16>, vector<32x128xbf16>, vector<32x128xf32> -> vector<32x128xf32>
    %cst_22 = arith.constant 0.000000e+00 : f32
    %31 = vector.broadcast %cst_22 : f32 to vector<32x128xf32>
    %32 = arith.maximumf %30, %31 : vector<32x128xf32>
    %33 = arith.truncf %32 : vector<32x128xf32> to vector<32x128xbf16>
    %c0_23 = arith.constant 0 : index
    %c0_24 = arith.constant 0 : index
    %34 = vector.load %arg4[%c0_23, %c0_24] : memref<16x32xbf16, #tpu.memory_space<vmem>>, vector<16x32xbf16>
    %cst_25 = arith.constant dense<0.000000e+00> : vector<16x128xf32>
    %35 = tpu.matmul %34, %33, %cst_25 {dimension_numbers = #tpu.dot_dimension_numbers<[1], [0], [0], [1], [0, 0, 1, 1], [], []>} : vector<16x32xbf16>, vector<32x128xbf16>, vector<16x128xf32> -> vector<16x128xf32>
    %c0_26 = arith.constant 0 : index
    %c0_27 = arith.constant 0 : index
    %36 = vector.load %arg8[%c0_26, %c0_27] : memref<16x128xf32, #tpu.memory_space<vmem>>, vector<16x128xf32>
    tpu.vector_store %arg8[%c0_26, %c0_27], %35 {strides = array<i32>} : memref<16x128xf32, #tpu.memory_space<vmem>>, vector<16x128xf32>,
    %37 = arith.truncf %35 : vector<16x128xf32> to vector<16x128xbf16>
    %c0_28 = arith.constant 0 : index
    %c0_29 = arith.constant 0 : index
    %38 = vector.load %arg5[%c0_28, %c0_29] : memref<128x128xbf16, #tpu.memory_space<vmem>>, vector<128x128xbf16>
    %cst_30 = arith.constant dense<0.000000e+00> : vector<16x128xf32>
    %39 = tpu.matmul %37, %38, %cst_30 {dimension_numbers = #tpu.dot_dimension_numbers<[1], [0], [0], [1], [0, 0, 1, 1], [], []>} : vector<16x128xbf16>, vector<128x128xbf16>, vector<16x128xf32> -> vector<16x128xf32>
    %c0_31 = arith.constant 0 : index
    %c0_32 = arith.constant 0 : index
    %40 = vector.load %arg6[%c0_31, %c0_32] : memref<1x128xf32, #tpu.memory_space<vmem>>, vector<1x128xf32>
    %41 = vector.broadcast %40 : vector<1x128xf32> to vector<16x128xf32>
    %42 = arith.addf %39, %41 : vector<16x128xf32>
    %43 = tpu.iota {dimensions = array<i32: 1>} : vector<16x128xi32>
    %c8_i32 = arith.constant 8 : i32
    %44 = vector.broadcast %c8_i32 : i32 to vector<16x128xi32>
    %45 = arith.cmpi slt, %43, %44 : vector<16x128xi32>
    %cst_33 = arith.constant -1.000000e+30 : f32
    %46 = vector.broadcast %cst_33 : f32 to vector<16x128xf32>
    %47 = arith.select %45, %42, %46 : vector<16x128xi1>, vector<16x128xf32>
    %cst_34 = arith.constant dense<0xFF800000> : vector<16xf32>
    %48 = vector.multi_reduction <maximumf>, %47, %cst_34 [1] : vector<16x128xf32> to vector<16xf32>
    %49 = vector.shape_cast %48 : vector<16xf32> to vector<16x1xf32>
    %50 = vector.broadcast %49 : vector<16x1xf32> to vector<16x128xf32>
    %51 = arith.subf %47, %50 : vector<16x128xf32>
    %52 = math.exp %51 : vector<16x128xf32>
    %cst_35 = arith.constant dense<0.000000e+00> : vector<16xf32>
    %53 = vector.multi_reduction <add>, %52, %cst_35 [1] : vector<16x128xf32> to vector<16xf32>
    %54 = vector.shape_cast %53 : vector<16xf32> to vector<16x1xf32>
    %55 = math.log %54 : vector<16x1xf32>
    %56 = vector.broadcast %55 : vector<16x1xf32> to vector<16x128xf32>
    %57 = arith.subf %51, %56 : vector<16x128xf32>
    %c0_36 = arith.constant 0 : index
    %c0_37 = arith.constant 0 : index
    %58 = vector.load %arg7[%c0_36, %c0_37] : memref<16x128xf32, #tpu.memory_space<vmem>>, vector<16x128xf32>
    tpu.vector_store %arg7[%c0_36, %c0_37], %57 {strides = array<i32>} : memref<16x128xf32, #tpu.memory_space<vmem>>, vector<16x128xf32>,
    return
  }
  func.func @transform_0(%arg0: i32) -> (i32, i32) {
    %c0_i32 = arith.constant 0 : i32
    %c0_i32_0 = arith.constant 0 : i32
    %c0_i32_1 = arith.constant 0 : i32
    return %c0_i32, %c0_i32_0 : i32, i32
  }
  func.func @transform_1(%arg0: i32) -> (i32, i32) {
    %c0_i32 = arith.constant 0 : i32
    %c0_i32_0 = arith.constant 0 : i32
    %c0_i32_1 = arith.constant 0 : i32
    return %c0_i32, %c0_i32_0 : i32, i32
  }
  func.func @transform_2(%arg0: i32) -> (i32, i32, i32) {
    %c0_i32 = arith.constant 0 : i32
    %c0_i32_0 = arith.constant 0 : i32
    %c0_i32_1 = arith.constant 0 : i32
    %c0_i32_2 = arith.constant 0 : i32
    return %c0_i32, %c0_i32_0, %c0_i32_1 : i32, i32, i32
  }
  func.func @transform_3(%arg0: i32) -> (i32, i32) {
    %c0_i32 = arith.constant 0 : i32
    %c0_i32_0 = arith.constant 0 : i32
    %c0_i32_1 = arith.constant 0 : i32
    return %c0_i32, %c0_i32_0 : i32, i32
  }
  func.func @transform_4(%arg0: i32) -> (i32, i32) {
    %c0_i32 = arith.constant 0 : i32
    %c0_i32_0 = arith.constant 0 : i32
    %c0_i32_1 = arith.constant 0 : i32
    return %c0_i32, %c0_i32_0 : i32, i32
  }
  func.func @transform_5(%arg0: i32) -> (i32, i32) {
    %c0_i32 = arith.constant 0 : i32
    %c0_i32_0 = arith.constant 0 : i32
    %c0_i32_1 = arith.constant 0 : i32
    return %c0_i32, %c0_i32_0 : i32, i32
  }
  func.func @transform_6(%arg0: i32) -> (i32, i32) {
    %c0_i32 = arith.constant 0 : i32
    %c0_i32_0 = arith.constant 0 : i32
    %c0_i32_1 = arith.constant 0 : i32
    return %c0_i32, %c0_i32_0 : i32, i32
  }
  func.func @transform_7(%arg0: i32) -> (i32, i32) {
    %c0_i32 = arith.constant 0 : i32
    %c0_i32_0 = arith.constant 0 : i32
    %c0_i32_1 = arith.constant 0 : i32
    return %c0_i32, %c0_i32_0 : i32, i32
  }
}

</mosaic_0001>

<bundles_post_ra>
// kernel: gcn_forward_padded.1
= control target key start
LH: loop header
LB: loop body
LE: loop exit
PB: predicated region body
PF: predicated region fallthrough
CT: control target
= control target key end

     0   :  { %13 = vsyncpa [#allocation3], 0  ;;  %s1584_s0 = inlined_call_operand.hbm [shape: bf16[32,32], index: 0, kind: input, shape index: {}]   ;;  %s1585_s1 = inlined_call_operand.hbm [shape: bf16[32,128], index: 1, kind: input, shape index: {}]   ;;  %s1586_s2 = inlined_call_operand.hbm [shape: bf16[4,128,128], index: 2, kind: input, shape index: {}]   ;;  %s1587_s3 = inlined_call_operand.vmem [shape: bf16[16,32], index: 3, kind: input, shape index: {}]   ;;  %s1588_s4 = inlined_call_operand.hbm [shape: bf16[128,128], index: 4, kind: input, shape index: {}]   ;;  %s1589_s5 = inlined_call_operand.vmem [shape: f32[1,128], index: 5, kind: input, shape index: {}]   ;;  %s1590_s6 = inlined_call_operand.vmem [shape: f32[16,128], index: 6, kind: output, shape index: {0}]   ;;  %s1591_s7 = inlined_call_operand.vmem [shape: f32[16,128], index: 7, kind: output, shape index: {1}]  }
   0x1   :  { %14 = vsyncpa [#allocation5], 0 }
   0x2   :  { %15 = vsyncpa [#allocation8], 0  ;;  %s1423_s24 = smov [#allocation4]   ;;  %s1424_s26 = smov [#allocation2]  }
   0x3   :  { %s33_s25 = sshll.u32 %s1423_s24, 4  ;;  %s21_s27 = sshll.u32 %s1424_s26, 4  ;;  %s34_s25 = int_to_ptr.vmem [resolvable:$true] %s33_s25  ;;  %s1471_s27 = int_to_ptr.vmem [resolvable:$true] %s21_s27 }
   0x4   :  { %s1329_s30 = scalar_lea.hbm %s1585_s1, 256 }
   0x5   :  { %p1330_p0 = scmp.ne.s32.totalorder %s1585_s1, %s1329_s30  ;;  %p1333_p1 = scmp.lt.u32.totalorder %s1329_s30, %s1585_s1 }
   0x7   :  { %p1335_p2 = pnand %p1333_p1, %p1330_p0 }
   0x9   :  { %1338 = shalt.err (!%p1335_p2)
}
   0xa   :  { %s1339_s12 = scalar_lea.vmem %s34_s25, 256  ;;  %p1344_p4 = scmp.lt.s32.totalorder %s34_s25, %s34_s25 }
   0xb   :  { %p1340_p3 = scmp.ne.s32.totalorder %s34_s25, %s1339_s12  ;;  %p1345_p5 = scmp.lt.s32.totalorder %s1339_s12, %s1339_s12 }
   0xd   :  { %p1346_p6 = por %p1345_p5, %p1344_p4 }
   0xf   :  { %p1347_p7 = pnand %p1346_p6, %p1340_p3 }
  0x11   :  { %1350 = shalt.err (!%p1347_p7)
}
  0x12   :  { %s1425_s13 = smov 64   ;;  %s1426_s14 = smov 4  }
  0x13   :  { %39 = dma.hbm_to_vmem [thread:$0]  %s1585_s1, 256, %s34_s25, [#allocation5], %s1425_s13, %s1425_s13, %s1426_s14  }
  0x14   :  { %s1351_s19 = scalar_lea.hbm %s1584_s0, 256 }
  0x15   :  { %p1352_p8 = scmp.ne.s32.totalorder %s1584_s0, %s1351_s19  ;;  %p1355_p9 = scmp.lt.u32.totalorder %s1351_s19, %s1584_s0 }
  0x17   :  { %p1357_p10 = pnand %p1355_p9, %p1352_p8 }
  0x19   :  { %1360 = shalt.err (!%p1357_p10)
}
  0x1a   :  { %s1361_s24 = scalar_lea.vmem %s1471_s27, 256  ;;  %p1366_p12 = scmp.lt.s32.totalorder %s1471_s27, %s1471_s27 }
  0x1b   :  { %p1362_p11 = scmp.ne.s32.totalorder %s1471_s27, %s1361_s24  ;;  %p1367_p13 = scmp.lt.s32.totalorder %s1361_s24, %s1361_s24 }
  0x1d   :  { %p1368_p0 = por %p1367_p13, %p1366_p12 }
  0x1f   :  { %p1369_p1 = pnand %p1368_p0, %p1362_p11 }
  0x21   :  { %1372 = shalt.err (!%p1369_p1)
}
  0x22   :  { %27 = dma.hbm_to_vmem [thread:$0]  %s1584_s0, 256, %s1471_s27, [#allocation3], %s1425_s13, %s1425_s13, %s1426_s14  }
  0x23   :  { %s1427_s26 = smov [#allocation6]   ;;  %s1428_s29 = smov [#allocation7]  }
  0x24   :  { %s45_s28 = sshll.u32 %s1427_s26, 4  ;;  %s59_s30 = sshll.u32 %s1428_s29, 4  ;;  %s46_s28 = int_to_ptr.vmem [resolvable:$true] %s45_s28  ;;  %s1508_s30 = int_to_ptr.vmem [resolvable:$true] %s59_s30 }
  0x25   :  { %s1373_s10 = scalar_lea.hbm %s1586_s2, 4096 }
  0x26   :  { %p1374_p2 = scmp.ne.s32.totalorder %s1586_s2, %s1373_s10  ;;  %p1377_p3 = scmp.lt.u32.totalorder %s1373_s10, %s1586_s2 }
  0x28   :  { %p1379_p4 = pnand %p1377_p3, %p1374_p2 }
  0x2a   :  { %1382 = shalt.err (!%p1379_p4)
}
  0x2b   :  { %s1383_s0 = scalar_lea.vmem %s46_s28, 4096  ;;  %p1388_p6 = scmp.lt.s32.totalorder %s46_s28, %s46_s28 }
  0x2c   :  { %p1384_p5 = scmp.ne.s32.totalorder %s46_s28, %s1383_s0  ;;  %p1389_p7 = scmp.lt.s32.totalorder %s1383_s0, %s1383_s0 }
  0x2e   :  { %p1390_p8 = por %p1389_p7, %p1388_p6 }
  0x30   :  { %p1391_p9 = pnand %p1390_p8, %p1384_p5 }
  0x32   :  { %1394 = shalt.err (!%p1391_p9)
}
  0x33   :  { %51 = dma.hbm_to_vmem [thread:$0]  %s1586_s2, 4096, %s46_s28, [#allocation5], %s1425_s13, %s1425_s13, %s1426_s14  }
  0x34   :  { %s1395_s20 = scalar_lea.hbm %s1588_s4, 1024 }
  0x35   :  { %p1396_p10 = scmp.ne.s32.totalorder %s1588_s4, %s1395_s20  ;;  %p1399_p11 = scmp.lt.u32.totalorder %s1395_s20, %s1588_s4 }
  0x37   :  { %p1401_p12 = pnand %p1399_p11, %p1396_p10 }
  0x39   :  { %1404 = shalt.err (!%p1401_p12)
}
  0x3a   :  { %s1405_s1 = scalar_lea.vmem %s1508_s30, 1024  ;;  %p1410_p0 = scmp.lt.s32.totalorder %s1508_s30, %s1508_s30 }
  0x3b   :  { %p1406_p13 = scmp.ne.s32.totalorder %s1508_s30, %s1405_s1  ;;  %p1411_p1 = scmp.lt.s32.totalorder %s1405_s1, %s1405_s1 }
  0x3d   :  { %p1412_p2 = por %p1411_p1, %p1410_p0 }
  0x3f   :  { %p1413_p3 = pnand %p1412_p2, %p1406_p13 }
  0x41   :  { %1416 = shalt.err (!%p1413_p3)
}
  0x42   :  { %65 = dma.hbm_to_vmem [thread:$0]  %s1588_s4, 1024, %s1508_s30, [#allocation8], %s1425_s13, %s1425_s13, %s1426_s14  }
  0x43   :  { %1417 = dma.done.wait [#allocation3], 256  }
  0x44   :  { %1418 = vsyncadd [#allocation3], 4294967040 }
  0x45   :  { %1419 = dma.done.wait [#allocation5], 4352  }
  0x46   :  { %1420 = vsyncadd [#allocation5], 4294962944 }
  0x47   :  { %1421 = dma.done.wait [#allocation8], 1024  }
  0x48   :  { %1422 = vsyncadd [#allocation8], 4294966272  ;;  %v1276_v0 = vld [vmem:[#allocation6] sm:$0xff]   ;;  %v1277_v1 = vld [vmem:[#allocation6 + $0x8] sm:$0xff]   ;;  %vm226_vm0 = vcmask 261120   ;;  %vm1430_vm1 = vmmov 0  }
  0x49   :  { %1128 = vmatprep.subr.bf16.mxu0 %v1276_v0  ;;  %v1278_v2 = vld [vmem:[#allocation6 + $0x10] sm:$0xff]   ;;  %v1279_v3 = vld [vmem:[#allocation6 + $0x18] sm:$0xff]   ;;  %v1280_v5 = vld [vmem:[#allocation6 + $0x20] sm:$0xff]  }
  0x4a   :  { %1129 = vmatpush3.bf16.msra.mxu0 %v1276_v0  ;;  %v1284_v4 = vld [vmem:[#allocation4] sm:$0xff]   ;;  %v1281_v6 = vld [vmem:[#allocation6 + $0x28] sm:$0xff]   ;;  %v1283_v8 = vld [vmem:[#allocation6 + $0x38] sm:$0xff]  }
  0x4b   :  { %1130 = vmatprep.subr.bf16.mxu0 %v1277_v1  ;;  %1144 = vmatprep.mubr.bf16.mxu0 %v1284_v4  ;;  %v1282_v7 = vld [vmem:[#allocation6 + $0x30] sm:$0xff]   ;;  %v1285_v9 = vld [vmem:[#allocation4 + $0x8] sm:$0xff]   ;;  %v1545_v10 = vld [vmem:[#allocation2] sm:$0xff]  }
  0x4c   :  { %v1288_v11 = vld [vmem:[#allocation6 + $0x40] sm:$0xff]   ;;  %v1289_v12 = vld [vmem:[#allocation6 + $0x48] sm:$0xff]   ;;  %v1290_v13 = vld [vmem:[#allocation6 + $0x50] sm:$0xff]  }
  0x4d   :  { %1156 = vmatprep.subr.bf16.mxu1 %v1288_v11  ;;  %v1291_v14 = vld [vmem:[#allocation6 + $0x58] sm:$0xff]   ;;  %v1292_v15 = vld [vmem:[#allocation6 + $0x60] sm:$0xff]   ;;  %v1293_v16 = vld [vmem:[#allocation6 + $0x68] sm:$0xff]  }
  0x4e   :  { %1131 = vmatpush3.bf16.msra.mxu0 %v1277_v1  ;;  %1157 = vmatpush3.bf16.msra.mxu1 %v1288_v11  ;;  %v1549_v23 = vld [vmem:[#allocation2 + $0x8] sm:$0xff]   ;;  %v1294_v24 = vld [vmem:[#allocation6 + $0x70] sm:$0xff]   ;;  %v1295_v25 = vld [vmem:[#allocation6 + $0x78] sm:$0xff]  }
  0x4f   :  { %1132 = vmatprep.subr.bf16.mxu0 %v1278_v2  ;;  %1158 = vmatprep.subr.bf16.mxu1 %v1289_v12  ;;  %v1296_v42 = vld [vmem:[#allocation6 + $0x80] sm:$0xff]   ;;  %v1297_v43 = vld [vmem:[#allocation6 + $0x88] sm:$0xff]   ;;  %v1298_v44 = vld [vmem:[#allocation6 + $0x90] sm:$0xff]  }
  0x50   :  { %v1299_v45 = vld [vmem:[#allocation6 + $0x98] sm:$0xff]   ;;  %v1300_v46 = vld [vmem:[#allocation6 + $0xa0] sm:$0xff]   ;;  %v1301_v47 = vld [vmem:[#allocation6 + $0xa8] sm:$0xff]  }
  0x51   :  { %v1302_v48 = vld [vmem:[#allocation6 + $0xb0] sm:$0xff]   ;;  %v1303_v49 = vld [vmem:[#allocation6 + $0xb8] sm:$0xff]  }
  0x52   :  { %1133 = vmatpush3.bf16.msra.mxu0 %v1278_v2  ;;  %1159 = vmatpush3.bf16.msra.mxu1 %v1289_v12  ;;  %v1304_v2 = vld [vmem:[#allocation6 + $0xc0] sm:$0xff]   ;;  %v1306_v4 = vld [vmem:[#allocation6 + $0xd0] sm:$0xff]  }
  0x53   :  { %1134 = vmatprep.subr.bf16.mxu0 %v1279_v3  ;;  %1160 = vmatprep.subr.bf16.mxu1 %v1290_v13 }
  0x56   :  { %1135 = vmatpush3.bf16.msra.mxu0 %v1279_v3  ;;  %1161 = vmatpush3.bf16.msra.mxu1 %v1290_v13  ;;  %v1305_v3 = vld [vmem:[#allocation6 + $0xc8] sm:$0xff]  }
  0x57   :  { %1136 = vmatprep.subr.bf16.mxu0 %v1280_v5  ;;  %1162 = vmatprep.subr.bf16.mxu1 %v1291_v14 }
  0x5a   :  { %1137 = vmatpush3.bf16.msra.mxu0 %v1280_v5  ;;  %1163 = vmatpush3.bf16.msra.mxu1 %v1291_v14  ;;  %v1307_v5 = vld [vmem:[#allocation6 + $0xd8] sm:$0xff]  }
  0x5b   :  { %1138 = vmatprep.subr.bf16.mxu0 %v1281_v6  ;;  %1164 = vmatprep.subr.bf16.mxu1 %v1292_v15 }
  0x5e   :  { %1139 = vmatpush3.bf16.msra.mxu0 %v1281_v6  ;;  %1165 = vmatpush3.bf16.msra.mxu1 %v1292_v15  ;;  %v1308_v6 = vld [vmem:[#allocation6 + $0xe0] sm:$0xff]  }
  0x5f   :  { %1140 = vmatprep.subr.bf16.mxu0 %v1282_v7  ;;  %1166 = vmatprep.subr.bf16.mxu1 %v1293_v16 }
  0x62   :  { %1141 = vmatpush3.bf16.msra.mxu0 %v1282_v7  ;;  %1167 = vmatpush3.bf16.msra.mxu1 %v1293_v16  ;;  %v1309_v7 = vld [vmem:[#allocation6 + $0xe8] sm:$0xff]  }
  0x63   :  { %1142 = vmatprep.subr.bf16.mxu0 %v1283_v8  ;;  %1168 = vmatprep.subr.bf16.mxu1 %v1294_v24 }
  0x66   :  { %1143 = vmatpush3.bf16.msra.mxu0 %v1283_v8  ;;  %1169 = vmatpush3.bf16.msra.mxu1 %v1294_v24  ;;  %v1310_v8 = vld [vmem:[#allocation6 + $0xf0] sm:$0xff]  }
  0x67   :  { %1170 = vmatprep.subr.bf16.mxu1 %v1295_v25 }
  0x69   :  { %1145 = vmatmul.mubr.bf16.vlgmr.msra.gmra.mrb[0].mxu0 %v1285_v9  ;;  %v1311_v9 = vld [vmem:[#allocation6 + $0xf8] sm:$0xff]  }
  0x6a   :  { %1152 = vmatprep.mubr.msk.bf16.mxu0 %vm226_vm0, %v1545_v10  ;;  %1171 = vmatpush3.bf16.msra.mxu1 %v1295_v25 }
 0x13c   :  { %v1146_v17 = vpop.f32.mrb[0].mxu0 }
 0x13d   :  { %v199_v18 = vpop.f32.mrb[1].mxu0 }
 0x13e   :  { %v1147_v19 = vpop.f32.mrb[2].mxu0 }
 0x13f   :  { %v215_v20 = vpack.c.bf16 %v1147_v19, %v1146_v17  ;;  %v202_v21 = vpop.f32.mrb[3].mxu0 }
 0x140   :  { %v214_v22 = vpack.c.bf16 %v202_v21, %v199_v18 }
 0x142   :  { %1148 = vmatprep.subr.bf16.mxu0 %v214_v22 }
 0x143   :  { %1149 = vmatpush3.bf16.msra.mxu0 %v214_v22 }
 0x144   :  { %1150 = vmatprep.subr.bf16.mxu0 %v215_v20 }
 0x147   :  { %1151 = vmatpush3.bf16.msra.mxu0 %v215_v20 }
 0x14a   :  { %1153 = vmatmul.mubr.msk.bf16.vlgmr.msra.gmra.mrb[4].mxu0 %vm226_vm0, %v1549_v23 }
 0x14b   :  { %1180 = vmatprep.mubr.msk.bf16.mxu0 %vm226_vm0, %v1545_v10 }
 0x21d   :  { %v1154_v26 = vpop.f32.mrb[4].mxu0 }
 0x21e   :  { %v267_v27 = vpop.f32.mrb[5].mxu0  ;;  %v284_v29 = vmax.f32 %v1154_v26, 0.0 }
 0x21f   :  { %v1155_v28 = vpop.f32.mrb[6].mxu0  ;;  %v282_v32 = vmax.f32 %v267_v27, 0.0  ;;  %v1429_v27 = vmov 0.0  }
 0x220   :  { %v285_v30 = vmax.f32 %v1155_v28, 0.0  ;;  %v270_v31 = vpop.f32.mrb[7].mxu0  ;;  %v1313_v28 = vld [vmem:[#allocation7] sm:$0xff]  }
 0x221   :  { %v283_v33 = vmax.f32 %v270_v31, 0.0  ;;  %v1316_v31 = vld [vmem:[#allocation7 + $0x18] sm:$0xff]  }
 0x222   :  { %v287_v34 = vpack.c.bf16 %v285_v30, %v284_v29  ;;  %v1314_v29 = vld [vmem:[#allocation7 + $0x8] sm:$0xff]   ;;  %v1315_v30 = vld [vmem:[#allocation7 + $0x10] sm:$0xff]  }
 0x223   :  { %v286_v35 = vpack.c.bf16 %v283_v33, %v282_v32  ;;  %v1317_v32 = vld [vmem:[#allocation7 + $0x20] sm:$0xff]   ;;  %v1319_v33 = vld [vmem:[#allocation7 + $0x30] sm:$0xff]  }
 0x225   :  { %1172 = vmatprep.mubr.bf16.mxu1 %v286_v35 }
 0x226   :  { %1173 = vmatmul.mubr.bf16.vlgmr.msra.gmra.mrb[0].mxu1 %v287_v34 }
 0x227   :  { %1208 = vmatprep.mubr.msk.bf16.mxu1 %vm226_vm0, %v1545_v10 }
 0x2f9   :  { %v1174_v36 = vpop.f32.mrb[0].mxu1 }
 0x2fa   :  { %v387_v37 = vpop.f32.mrb[1].mxu1 }
 0x2fb   :  { %v1175_v38 = vpop.f32.mrb[2].mxu1 }
 0x2fc   :  { %v403_v39 = vpack.c.bf16 %v1175_v38, %v1174_v36  ;;  %v390_v40 = vpop.f32.mrb[3].mxu1 }
 0x2fd   :  { %v402_v41 = vpack.c.bf16 %v390_v40, %v387_v37 }
 0x2ff   :  { %1176 = vmatprep.subr.bf16.mxu0 %v402_v41 }
 0x300   :  { %1177 = vmatpush3.bf16.msra.mxu0 %v402_v41 }
 0x301   :  { %1178 = vmatprep.subr.bf16.mxu0 %v403_v39 }
 0x304   :  { %1179 = vmatpush3.bf16.msra.mxu0 %v403_v39 }
 0x305   :  { %1184 = vmatprep.subr.bf16.mxu0 %v1296_v42 }
 0x307   :  { %1181 = vmatmul.mubr.msk.bf16.vlgmr.msra.gmra.mrb[8].mxu0 %vm226_vm0, %v1549_v23 }
 0x308   :  { %1185 = vmatpush3.bf16.msra.mxu0 %v1296_v42 }
 0x309   :  { %1186 = vmatprep.subr.bf16.mxu0 %v1297_v43 }
 0x30c   :  { %1187 = vmatpush3.bf16.msra.mxu0 %v1297_v43 }
 0x30d   :  { %1188 = vmatprep.subr.bf16.mxu0 %v1298_v44 }
 0x310   :  { %1189 = vmatpush3.bf16.msra.mxu0 %v1298_v44  ;;  %v1312_v44 = vld [vmem:[%s1587_s3] sm:$0xff]  }
 0x311   :  { %1190 = vmatprep.subr.bf16.mxu0 %v1299_v45 }
 0x314   :  { %1191 = vmatpush3.bf16.msra.mxu0 %v1299_v45  ;;  %v1320_v45 = vld [vmem:[#allocation7 + $0x38] sm:$0xff]  }
 0x315   :  { %1192 = vmatprep.subr.bf16.mxu0 %v1300_v46 }
 0x318   :  { %1193 = vmatpush3.bf16.msra.mxu0 %v1300_v46 }
 0x319   :  { %1194 = vmatprep.subr.bf16.mxu0 %v1301_v47 }
 0x31c   :  { %1195 = vmatpush3.bf16.msra.mxu0 %v1301_v47 }
 0x31d   :  { %1196 = vmatprep.subr.bf16.mxu0 %v1302_v48 }
 0x320   :  { %1197 = vmatpush3.bf16.msra.mxu0 %v1302_v48 }
 0x321   :  { %1198 = vmatprep.subr.bf16.mxu0 %v1303_v49 }
 0x324   :  { %1199 = vmatpush3.bf16.msra.mxu0 %v1303_v49 }
 0x3da   :  { %v1182_v50 = vpop.f32.mrb[8].mxu0 }
 0x3db   :  { %v438_v51 = vpop.f32.mrb[9].mxu0  ;;  %v455_v53 = vmax.f32 %v1182_v50, 0.0 }
 0x3dc   :  { %v1183_v52 = vpop.f32.mrb[10].mxu0  ;;  %v453_v56 = vmax.f32 %v438_v51, 0.0  ;;  %v967_v51 = vlaneseq }
 0x3dd   :  { %v456_v54 = vmax.f32 %v1183_v52, 0.0  ;;  %v441_v55 = vpop.f32.mrb[11].mxu0 }
 0x3de   :  { %v454_v57 = vmax.f32 %v441_v55, 0.0  ;;  %v968_v52 = vand.u32 127, %v967_v51 }
 0x3df   :  { %v458_v58 = vpack.c.bf16 %v456_v54, %v455_v53  ;;  %v1051_v53 = vld [vmem:[%s1589_s5] ss:$0 sm:$0xff] }
 0x3e0   :  { %v457_v59 = vpack.c.bf16 %v454_v57, %v453_v56  ;;  %vm969_vm2 = vcmp.lt.s32.totalorder %v968_v52, 8 }
 0x3e2   :  { %1200 = vmatprep.mubr.bf16.mxu0 %v457_v59 }
 0x3e3   :  { %1201 = vmatmul.mubr.bf16.vlgmr.msra.gmra.mrb[12].mxu0 %v458_v58 }
 0x3e4   :  { %1236 = vmatprep.mubr.msk.bf16.mxu0 %vm226_vm0, %v1545_v10 }
 0x4b6   :  { %v1202_v60 = vpop.f32.mrb[12].mxu0 }
 0x4b7   :  { %v558_v61 = vpop.f32.mrb[13].mxu0 }
 0x4b8   :  { %v1203_v62 = vpop.f32.mrb[14].mxu0 }
 0x4b9   :  { %v574_v63 = vpack.c.bf16 %v1203_v62, %v1202_v60  ;;  %v561_v0 = vpop.f32.mrb[15].mxu0 }
 0x4ba   :  { %v573_v1 = vpack.c.bf16 %v561_v0, %v558_v61 }
 0x4bc   :  { %1204 = vmatprep.subr.bf16.mxu1 %v573_v1 }
 0x4bd   :  { %1205 = vmatpush3.bf16.msra.mxu1 %v573_v1 }
 0x4be   :  { %1206 = vmatprep.subr.bf16.mxu1 %v574_v63 }
 0x4c1   :  { %1207 = vmatpush3.bf16.msra.mxu1 %v574_v63 }
 0x4c2   :  { %1212 = vmatprep.subr.bf16.mxu1 %v1304_v2 }
 0x4c4   :  { %1209 = vmatmul.mubr.msk.bf16.vlgmr.msra.gmra.mrb[4].mxu1 %vm226_vm0, %v1549_v23 }
 0x4c5   :  { %1213 = vmatpush3.bf16.msra.mxu1 %v1304_v2 }
 0x4c6   :  { %1214 = vmatprep.subr.bf16.mxu1 %v1305_v3 }
 0x4c9   :  { %1215 = vmatpush3.bf16.msra.mxu1 %v1305_v3 }
 0x4ca   :  { %1216 = vmatprep.subr.bf16.mxu1 %v1306_v4 }
 0x4cd   :  { %1217 = vmatpush3.bf16.msra.mxu1 %v1306_v4 }
 0x4ce   :  { %1218 = vmatprep.subr.bf16.mxu1 %v1307_v5 }
 0x4d1   :  { %1219 = vmatpush3.bf16.msra.mxu1 %v1307_v5 }
 0x4d2   :  { %1220 = vmatprep.subr.bf16.mxu1 %v1308_v6 }
 0x4d5   :  { %1221 = vmatpush3.bf16.msra.mxu1 %v1308_v6 }
 0x4d6   :  { %1222 = vmatprep.subr.bf16.mxu1 %v1309_v7 }
 0x4d9   :  { %1223 = vmatpush3.bf16.msra.mxu1 %v1309_v7 }
 0x4da   :  { %1224 = vmatprep.subr.bf16.mxu1 %v1310_v8 }
 0x4dd   :  { %1225 = vmatpush3.bf16.msra.mxu1 %v1310_v8 }
 0x4de   :  { %1226 = vmatprep.subr.bf16.mxu1 %v1311_v9 }
 0x4e1   :  { %1227 = vmatpush3.bf16.msra.mxu1 %v1311_v9 }
 0x4e2   :  { %1248 = vmatprep.subr.bf16.mxu1 %v1429_v27 }
 0x597   :  { %v1210_v10 = vpop.f32.mrb[4].mxu1 }
 0x598   :  { %v609_v11 = vpop.f32.mrb[5].mxu1  ;;  %v626_v13 = vmax.f32 %v1210_v10, 0.0 }
 0x599   :  { %v1211_v12 = vpop.f32.mrb[6].mxu1  ;;  %v624_v16 = vmax.f32 %v609_v11, 0.0 }
 0x59a   :  { %v627_v14 = vmax.f32 %v1211_v12, 0.0  ;;  %v612_v15 = vpop.f32.mrb[7].mxu1 }
 0x59b   :  { %v625_v17 = vmax.f32 %v612_v15, 0.0 }
 0x59c   :  { %v629_v18 = vpack.c.bf16 %v627_v14, %v626_v13 }
 0x59d   :  { %v628_v19 = vpack.c.bf16 %v625_v17, %v624_v16 }
 0x59f   :  { %1228 = vmatprep.mubr.bf16.mxu1 %v628_v19 }
 0x5a0   :  { %1229 = vmatmul.mubr.bf16.vlgmr.msra.gmra.mrb[8].mxu1 %v629_v18 }
 0x5a1   :  { %1264 = vmatprep.mubr.msk.bf16.mxu1 %vm1430_vm1, %v1429_v27  ;;  %1249 = vmatpush3.bf16.msra.mxu1 %v1313_v28 }
 0x5a2   :  { %1250 = vmatprep.subr.bf16.mxu1 %v1429_v27 }
 0x5a5   :  { %1251 = vmatpush3.bf16.msra.mxu1 %v1314_v29 }
 0x5a6   :  { %1252 = vmatprep.subr.bf16.mxu1 %v1429_v27 }
 0x5a9   :  { %1253 = vmatpush3.bf16.msra.mxu1 %v1315_v30 }
 0x5aa   :  { %1254 = vmatprep.subr.bf16.mxu1 %v1429_v27 }
 0x5ad   :  { %1255 = vmatpush3.bf16.msra.mxu1 %v1316_v31 }
 0x5ae   :  { %1256 = vmatprep.subr.bf16.mxu1 %v1429_v27 }
 0x5b1   :  { %1257 = vmatpush3.bf16.msra.mxu1 %v1317_v32 }
 0x5b2   :  { %1258 = vmatprep.subr.bf16.mxu1 %v1429_v27 }
 0x673   :  { %v1230_v20 = vpop.f32.mrb[8].mxu1 }
 0x674   :  { %v729_v21 = vpop.f32.mrb[9].mxu1 }
 0x675   :  { %v1231_v22 = vpop.f32.mrb[10].mxu1 }
 0x676   :  { %v745_v24 = vpack.c.bf16 %v1231_v22, %v1230_v20  ;;  %v732_v25 = vpop.f32.mrb[11].mxu1 }
 0x677   :  { %v744_v26 = vpack.c.bf16 %v732_v25, %v729_v21 }
 0x679   :  { %1232 = vmatprep.subr.bf16.mxu0 %v744_v26 }
 0x67a   :  { %1233 = vmatpush3.bf16.msra.mxu0 %v744_v26 }
 0x67b   :  { %1234 = vmatprep.subr.bf16.mxu0 %v745_v24 }
 0x67e   :  { %1235 = vmatpush3.bf16.msra.mxu0 %v745_v24 }
 0x67f   :  { %1240 = vmatprep.subr.bf16.mxu0 %v1429_v27 }
 0x681   :  { %1237 = vmatmul.mubr.msk.bf16.vlgmr.msra.gmra.mrb[16].mxu0 %vm226_vm0, %v1549_v23  ;;  %v1318_v23 = vld [vmem:[#allocation7 + $0x28] sm:$0xff]  }
 0x682   :  { %1244 = vmatprep.mubr.msk.bf16.mxu0 %vm1430_vm1, %v1429_v27  ;;  %1259 = vmatpush3.bf16.msra.mxu1 %v1318_v23 }
 0x683   :  { %1260 = vmatprep.subr.bf16.mxu1 %v1429_v27 }
 0x686   :  { %1261 = vmatpush3.bf16.msra.mxu1 %v1319_v33 }
 0x687   :  { %1262 = vmatprep.subr.bf16.mxu1 %v1429_v27 }
 0x68a   :  { %1263 = vmatpush3.bf16.msra.mxu1 %v1320_v45 }
 0x754   :  { %v1238_v34 = vpop.f32.mrb[16].mxu0 }
 0x755   :  { %v780_v35 = vpop.f32.mrb[17].mxu0  ;;  %v797_v37 = vmax.f32 %v1238_v34, 0.0 }
 0x756   :  { %v1239_v36 = vpop.f32.mrb[18].mxu0  ;;  %v795_v40 = vmax.f32 %v780_v35, 0.0 }
 0x757   :  { %v798_v38 = vmax.f32 %v1239_v36, 0.0  ;;  %v783_v39 = vpop.f32.mrb[19].mxu0 }
 0x758   :  { %v796_v41 = vmax.f32 %v783_v39, 0.0 }
 0x759   :  { %v800_v42 = vpack.c.bf16 %v798_v38, %v797_v37 }
 0x75a   :  { %v799_v43 = vpack.c.bf16 %v796_v41, %v795_v40 }
 0x75c   :  { %1241 = vmatpush3.bf16.msra.mxu0 %v799_v43 }
 0x75d   :  { %1242 = vmatprep.subr.bf16.mxu0 %v1429_v27 }
 0x760   :  { %1243 = vmatpush3.bf16.msra.mxu0 %v800_v42 }
 0x763   :  { %1245 = vmatmul.mubr.msk.bf16.vlgmr.msra.gmra.mrb[20].mxu0 %vm226_vm0, %v1312_v44 }
 0x836   :  { %v845_v46 = vpop.f32.mrb[20].mxu0 }
 0x837   :  { %852 = vst [vmem:[%s1591_s7] sm:$0xff] %v845_v46  ;;  %v1246_v47 = vpop.f32.mrb[21].mxu0 }
 0x838   :  { %v848_v48 = vpop.f32.mrb[22].mxu0 }
 0x839   :  { %853 = vst [vmem:[%s1591_s7 + $0x8] sm:$0xff] %v848_v48  ;;  %v854_v49 = vpack.c.bf16 %v848_v48, %v845_v46  ;;  %v1247_v50 = vpop.f32.mrb[23].mxu0 }
 0x83b   :  { %1265 = vmatmul.mubr.bf16.vlgmr.msra.gmra.mrb[12].mxu1 %v854_v49 }
 0x90e   :  { %v960_v54 = vpop.f32.mrb[12].mxu1 }
 0x90f   :  { %v961_v55 = vadd.f32 %v1051_v53, %v960_v54  ;;  %v1266_v56 = vpop.f32.mrb[13].mxu1 }
 0x910   :  { %v963_v57 = vpop.f32.mrb[14].mxu1 }
 0x911   :  { %v964_v58 = vadd.f32 %v1051_v53, %v963_v57  ;;  %v1267_v59 = vpop.f32.mrb[15].mxu1  ;;  %v970_v60 = vsel %vm969_vm2, %v961_v55, -1e+30 }
 0x912   :  { %972 = vmax.xlane.f32.xlu0 %v970_v60 }
 0x913   :  { %v971_v61 = vsel %vm969_vm2, %v964_v58, -1e+30 }
 0x916   :  { %974 = vmax.xlane.f32.xlu0 %v971_v61 }
 0x99f   :  { %v973_v62 = vpop.xlane.xlu0 %972 }
 0x9a0   :  { %v976_v63 = vsub.f32 %v970_v60, %v973_v62 }
 0x9a2   :  { %v978_v0 = vmul.f32 1.442695, %v976_v63 }
 0x9a3   :  { %v975_v1 = vpop.xlane.xlu0 %974 }
 0x9a4   :  { %v977_v2 = vsub.f32 %v971_v61, %v975_v1  ;;  %1321 = vpow2.f32 %v978_v0 }
 0x9a6   :  { %v980_v3 = vmul.f32 1.442695, %v977_v2 }
 0x9a8   :  { %1323 = vpow2.f32 %v980_v3 }
 0x9ae   :  { %v1322_v4 = vpop.eup %1321 }
 0x9af   :  { %982 = vadd.xlane.f32.xlu1 %v1322_v4 }
 0x9b2   :  { %v1324_v5 = vpop.eup %1323 }
 0x9b3   :  { %984 = vadd.xlane.f32.xlu1 %v1324_v5 }
 0xa3c   :  { %v983_v6 = vpop.xlane.xlu1 %982 }
 0xa3d   :  { %1325 = vlog2.f32 %v983_v6 }
 0xa40   :  { %v985_v7 = vpop.xlane.xlu1 %984 }
 0xa41   :  { %1327 = vlog2.f32 %v985_v7 }
 0xa47   :  { %v1326_v8 = vpop.eup %1325 }
 0xa48   :  { %v987_v9 = vmul.f32 0.6931472, %v1326_v8 }
 0xa4a   :  { %v990_v10 = vsub.f32 %v976_v63, %v987_v9 }
 0xa4b   :  { %v1328_v11 = vpop.eup %1327 }
 0xa4c   :  { %992 = vst [vmem:[%s1590_s6] sm:$0xff] %v990_v10  ;;  %v989_v12 = vmul.f32 0.6931472, %v1328_v11 }
 0xa4e   :  { %v991_v13 = vsub.f32 %v977_v2, %v989_v12 }
 0xa50   :  { %993 = vst [vmem:[%s1590_s6 + $0x8] sm:$0xff] %v991_v13 }
 0xa51   :  { %1002 = vsyncpa [#allocation3], 1 }
 0xa52   :  { %1003 = vsyncpa [#allocation5], 1 }
 0xa53   :  { %1004 = vsyncpa [#allocation8], 1 }

</bundles_post_ra>
